<compile_context>
chip_gen: v7x
topology: tpu7x:2x2x1
jax: 0.10.0
libtpu: 0.0.40
codegen_flags: <defaults>
</compile_context>

<pallas_src>
import jax
import jax.numpy as jnp
from jax.experimental import pallas as pl
from jax.experimental.pallas import tpu as pltpu

S, B, IN_DIM, HIDDEN, OUT_DIM = 8, 2, 16, 32, 1

# Weight-stack slot layout (shared by pack_params and the kernel).
_W_FNN1, _W_FNN2, _W_MLP1, _W_MLP2, _W_MLP3, _W_DEC, _W_LH, _W_REG = range(8)


# ---------------------------------------------------------------------------
# Single fused kernel: the entire TPP_MLP forward pass.
#   x_ref : (S*B, IN_DIM)        f32  VMEM
#   w_ref : (8, HIDDEN, HIDDEN)  f32  VMEM   packed weights (see slot layout)
#   b_ref : (8, HIDDEN)          f32  VMEM   packed biases
#   o_ref : (S*B, OUT_DIM)       f32  VMEM
# ---------------------------------------------------------------------------
def _tpp_mlp_kernel(x_ref, w_ref, b_ref, o_ref):
    def layer(h, i, relu):
        # Static slices of the packed stacks -> zero-cost ref views.
        y = (jnp.dot(h, w_ref[i], preferred_element_type=jnp.float32)
             + b_ref[i:i + 1, :])
        return jnp.maximum(y, 0.0) if relu else y

    # forwardNN: first layer uses only the real IN_DIM rows of the padded
    # fnn_w1 slot, so the input never needs feature padding.
    h = (jnp.dot(x_ref[...], w_ref[_W_FNN1, :IN_DIM, :],
                 preferred_element_type=jnp.float32)
         + b_ref[_W_FNN1:_W_FNN1 + 1, :])
    h = jnp.maximum(h, 0.0)
    h = layer(h, _W_FNN2, True)

    # mlp: 3x Linear+ReLU
    h = layer(h, _W_MLP1, True)
    h = layer(h, _W_MLP2, True)
    h = layer(h, _W_MLP3, True)

    # mlp_decoder (no activation)
    out = layer(h, _W_DEC, False)

    # 3x residual applications of the SAME linearHidden weights, fully
    # unrolled.  Weight loaded once; bias broadcast hoisted out of the loop
    # (JAX does not CSE broadcast_in_dim).
    lw = w_ref[_W_LH]
    lb = jnp.broadcast_to(b_ref[_W_LH:_W_LH + 1, :], out.shape)
    for _ in range(3):
        out = jnp.maximum(
            jnp.dot(out, lw, preferred_element_type=jnp.float32) + lb,
            0.0) + out

    # reg: slot _W_REG is reg_w zero-padded (HIDDEN,1)->(HIDDEN,HIDDEN); only
    # column 0 is valid.  The single HBM store of the whole kernel.
    y = (jnp.dot(out, w_ref[_W_REG], preferred_element_type=jnp.float32)
         + b_ref[_W_REG:_W_REG + 1, :])
    o_ref[...] = y[:, :OUT_DIM]


def tpp_mlp_forward(x, w_stack, b_stack):
    s, bsz, in_dim = x.shape
    x2d = x.reshape(s * bsz, in_dim)

    vmem = pl.BlockSpec(memory_space=pltpu.MemorySpace.VMEM)
    out = pl.pallas_call(
        _tpp_mlp_kernel,
        out_shape=jax.ShapeDtypeStruct((s * bsz, OUT_DIM), jnp.float32),
        in_specs=[vmem, vmem, vmem],
        out_specs=vmem,
    )(x2d, w_stack, b_stack)

    # torch: output.squeeze(); restricted to the out_dim axis so seq/batch
    # dims are never accidentally collapsed (identical result at these shapes).
    return jnp.squeeze(out.reshape(s, bsz, OUT_DIM), axis=-1)


# ---------------------------------------------------------------------------
# Parameter init (uniform(-0.1, 0.1), float32) and packing into two stacks.
# Weights are stored (in_features, out_features) so every linear is x @ W + b.
# LSTM / attention / lstm_decoder params exist in the torch module but are
# unused by forward(), so they are not created here.
# ---------------------------------------------------------------------------
def _uinit(key, shape):
    return jax.random.uniform(key, shape, jnp.float32, -0.1, 0.1)


def init_params(key):
    H = HIDDEN
    keys = iter(jax.random.split(key, 32))
    p = {}
    p["fnn_w1"] = _uinit(next(keys), (IN_DIM, H)); p["fnn_b1"] = _uinit(next(keys), (1, H))
    p["fnn_w2"] = _uinit(next(keys), (H, H));      p["fnn_b2"] = _uinit(next(keys), (1, H))
    for i in range(1, 4):
        p[f"mlp_w{i}"] = _uinit(next(keys), (H, H))
        p[f"mlp_b{i}"] = _uinit(next(keys), (1, H))
    p["mlp_dec_w"] = _uinit(next(keys), (H, H));   p["mlp_dec_b"] = _uinit(next(keys), (1, H))
    p["lh_w"] = _uinit(next(keys), (H, H));        p["lh_b"] = _uinit(next(keys), (1, H))
    p["reg_w"] = _uinit(next(keys), (H, OUT_DIM)); p["reg_b"] = _uinit(next(keys), (1, OUT_DIM))
    return p


def pack_params(p):
    """Pack the 17 tensors into (8,H,H) weight + (8,H) bias stacks (2 DMAs)."""
    H = HIDDEN

    def pad_k(w):   # (IN_DIM, H) -> (H, H), zero rows below
        return jnp.pad(w, ((0, H - w.shape[0]), (0, 0)))

    def pad_n(w):   # (H, OUT_DIM) -> (H, H), zero cols to the right
        return jnp.pad(w, ((0, 0), (0, H - w.shape[1])))

    def pad_b(b):   # (1, k) -> (H,)
        b = b.reshape(-1)
        return jnp.pad(b, (0, H - b.shape[0]))

    w_stack = jnp.stack([
        pad_k(p["fnn_w1"]), p["fnn_w2"],
        p["mlp_w1"], p["mlp_w2"], p["mlp_w3"],
        p["mlp_dec_w"], p["lh_w"], pad_n(p["reg_w"]),
    ]).astype(jnp.float32)                      # (8, H, H)
    b_stack = jnp.stack([
        pad_b(p["fnn_b1"]), pad_b(p["fnn_b2"]),
        pad_b(p["mlp_b1"]), pad_b(p["mlp_b2"]), pad_b(p["mlp_b3"]),
        pad_b(p["mlp_dec_b"]), pad_b(p["lh_b"]), pad_b(p["reg_b"]),
    ]).astype(jnp.float32)                      # (8, H)
    return w_stack, b_stack


if __name__ == "__main__":
    key = jax.random.PRNGKey(0)
    k_in, k_p = jax.random.split(key)
    x = jax.random.normal(k_in, (S, B, IN_DIM), jnp.float32)
    params = init_params(k_p)
    w_stack, b_stack = pack_params(params)     # packed once, reused per call

    out = jax.jit(tpp_mlp_forward)(x, w_stack, b_stack)
    out = jax.block_until_ready(out)
    assert out.shape == (S, B), out.shape
    assert bool(jnp.all(jnp.isfinite(out)))

    # cross-check against a pure-JAX reference of the same forward pass
    def ref(x, p):
        h = x.reshape(S * B, IN_DIM)
        h = jnp.maximum(h @ p["fnn_w1"] + p["fnn_b1"], 0.0)
        h = jnp.maximum(h @ p["fnn_w2"] + p["fnn_b2"], 0.0)
        m = jnp.maximum(h @ p["mlp_w1"] + p["mlp_b1"], 0.0)
        m = jnp.maximum(m @ p["mlp_w2"] + p["mlp_b2"], 0.0)
        m = jnp.maximum(m @ p["mlp_w3"] + p["mlp_b3"], 0.0)
        o = m @ p["mlp_dec_w"] + p["mlp_dec_b"]
        for _ in range(3):
            o = jnp.maximum(o @ p["lh_w"] + p["lh_b"], 0.0) + o
        o = o @ p["reg_w"] + p["reg_b"]
        return o.reshape(S, B)

    assert bool(jnp.allclose(out, ref(x, params), atol=1e-5, rtol=1e-5))
    print("KERNEL_OK")
</pallas_src>

<mosaic_0001>
module attributes {stable_mosaic.version = 11 : i64} {
  func.func @_tpp_mlp_kernel(%arg0: memref<16x16xf32, #tpu.memory_space<vmem>>, %arg1: memref<8x32x32xf32, #tpu.memory_space<vmem>>, %arg2: memref<8x32xf32, #tpu.memory_space<vmem>>, %arg3: memref<16x1xf32, #tpu.memory_space<vmem>>) attributes {dimension_semantics = [], scalar_prefetch = 0 : i64, scratch_operands = 0 : i64, tpu.core_type = #tpu.core_type<tc>} {
    %c0 = arith.constant 0 : index
    %c0_0 = arith.constant 0 : index
    %0 = vector.load %arg0[%c0, %c0_0] : memref<16x16xf32, #tpu.memory_space<vmem>>, vector<16x16xf32>
    %c0_1 = arith.constant 0 : index
    %c0_2 = arith.constant 0 : index
    %c0_3 = arith.constant 0 : index
    %1 = vector.load %arg1[%c0_1, %c0_2, %c0_3] : memref<8x32x32xf32, #tpu.memory_space<vmem>>, vector<1x16x32xf32>
    %2 = vector.shape_cast %1 : vector<1x16x32xf32> to vector<16x32xf32>
    %cst = arith.constant dense<0.000000e+00> : vector<16x32xf32>
    %3 = tpu.matmul %0, %2, %cst {dimension_numbers = #tpu.dot_dimension_numbers<[1], [0], [0], [1], [0, 0, 1, 1], [], []>} : vector<16x16xf32>, vector<16x32xf32>, vector<16x32xf32> -> vector<16x32xf32>
    %c0_4 = arith.constant 0 : index
    %c0_5 = arith.constant 0 : index
    %4 = vector.load %arg2[%c0_4, %c0_5] : memref<8x32xf32, #tpu.memory_space<vmem>>, vector<1x32xf32>
    %5 = vector.broadcast %4 : vector<1x32xf32> to vector<16x32xf32>
    %6 = arith.addf %3, %5 : vector<16x32xf32>
    %cst_6 = arith.constant 0.000000e+00 : f32
    %7 = vector.broadcast %cst_6 : f32 to vector<16x32xf32>
    %8 = arith.maximumf %6, %7 : vector<16x32xf32>
    %c1 = arith.constant 1 : index
    %c0_7 = arith.constant 0 : index
    %c0_8 = arith.constant 0 : index
    %9 = vector.load %arg1[%c1, %c0_7, %c0_8] : memref<8x32x32xf32, #tpu.memory_space<vmem>>, vector<1x32x32xf32>
    %10 = vector.shape_cast %9 : vector<1x32x32xf32> to vector<32x32xf32>
    %cst_9 = arith.constant dense<0.000000e+00> : vector<16x32xf32>
    %11 = tpu.matmul %8, %10, %cst_9 {dimension_numbers = #tpu.dot_dimension_numbers<[1], [0], [0], [1], [0, 0, 1, 1], [], []>} : vector<16x32xf32>, vector<32x32xf32>, vector<16x32xf32> -> vector<16x32xf32>
    %c1_10 = arith.constant 1 : index
    %c0_11 = arith.constant 0 : index
    %12 = vector.load %arg2[%c1_10, %c0_11] : memref<8x32xf32, #tpu.memory_space<vmem>>, vector<1x32xf32>
    %13 = vector.broadcast %12 : vector<1x32xf32> to vector<16x32xf32>
    %14 = arith.addf %11, %13 : vector<16x32xf32>
    %cst_12 = arith.constant 0.000000e+00 : f32
    %15 = vector.broadcast %cst_12 : f32 to vector<16x32xf32>
    %16 = arith.maximumf %14, %15 : vector<16x32xf32>
    %c2 = arith.constant 2 : index
    %c0_13 = arith.constant 0 : index
    %c0_14 = arith.constant 0 : index
    %17 = vector.load %arg1[%c2, %c0_13, %c0_14] : memref<8x32x32xf32, #tpu.memory_space<vmem>>, vector<1x32x32xf32>
    %18 = vector.shape_cast %17 : vector<1x32x32xf32> to vector<32x32xf32>
    %cst_15 = arith.constant dense<0.000000e+00> : vector<16x32xf32>
    %19 = tpu.matmul %16, %18, %cst_15 {dimension_numbers = #tpu.dot_dimension_numbers<[1], [0], [0], [1], [0, 0, 1, 1], [], []>} : vector<16x32xf32>, vector<32x32xf32>, vector<16x32xf32> -> vector<16x32xf32>
    %c2_16 = arith.constant 2 : index
    %c0_17 = arith.constant 0 : index
    %20 = vector.load %arg2[%c2_16, %c0_17] : memref<8x32xf32, #tpu.memory_space<vmem>>, vector<1x32xf32>
    %21 = vector.broadcast %20 : vector<1x32xf32> to vector<16x32xf32>
    %22 = arith.addf %19, %21 : vector<16x32xf32>
    %cst_18 = arith.constant 0.000000e+00 : f32
    %23 = vector.broadcast %cst_18 : f32 to vector<16x32xf32>
    %24 = arith.maximumf %22, %23 : vector<16x32xf32>
    %c3 = arith.constant 3 : index
    %c0_19 = arith.constant 0 : index
    %c0_20 = arith.constant 0 : index
    %25 = vector.load %arg1[%c3, %c0_19, %c0_20] : memref<8x32x32xf32, #tpu.memory_space<vmem>>, vector<1x32x32xf32>
    %26 = vector.shape_cast %25 : vector<1x32x32xf32> to vector<32x32xf32>
    %cst_21 = arith.constant dense<0.000000e+00> : vector<16x32xf32>
    %27 = tpu.matmul %24, %26, %cst_21 {dimension_numbers = #tpu.dot_dimension_numbers<[1], [0], [0], [1], [0, 0, 1, 1], [], []>} : vector<16x32xf32>, vector<32x32xf32>, vector<16x32xf32> -> vector<16x32xf32>
    %c3_22 = arith.constant 3 : index
    %c0_23 = arith.constant 0 : index
    %28 = vector.load %arg2[%c3_22, %c0_23] : memref<8x32xf32, #tpu.memory_space<vmem>>, vector<1x32xf32>
    %29 = vector.broadcast %28 : vector<1x32xf32> to vector<16x32xf32>
    %30 = arith.addf %27, %29 : vector<16x32xf32>
    %cst_24 = arith.constant 0.000000e+00 : f32
    %31 = vector.broadcast %cst_24 : f32 to vector<16x32xf32>
    %32 = arith.maximumf %30, %31 : vector<16x32xf32>
    %c4 = arith.constant 4 : index
    %c0_25 = arith.constant 0 : index
    %c0_26 = arith.constant 0 : index
    %33 = vector.load %arg1[%c4, %c0_25, %c0_26] : memref<8x32x32xf32, #tpu.memory_space<vmem>>, vector<1x32x32xf32>
    %34 = vector.shape_cast %33 : vector<1x32x32xf32> to vector<32x32xf32>
    %cst_27 = arith.constant dense<0.000000e+00> : vector<16x32xf32>
    %35 = tpu.matmul %32, %34, %cst_27 {dimension_numbers = #tpu.dot_dimension_numbers<[1], [0], [0], [1], [0, 0, 1, 1], [], []>} : vector<16x32xf32>, vector<32x32xf32>, vector<16x32xf32> -> vector<16x32xf32>
    %c4_28 = arith.constant 4 : index
    %c0_29 = arith.constant 0 : index
    %36 = vector.load %arg2[%c4_28, %c0_29] : memref<8x32xf32, #tpu.memory_space<vmem>>, vector<1x32xf32>
    %37 = vector.broadcast %36 : vector<1x32xf32> to vector<16x32xf32>
    %38 = arith.addf %35, %37 : vector<16x32xf32>
    %cst_30 = arith.constant 0.000000e+00 : f32
    %39 = vector.broadcast %cst_30 : f32 to vector<16x32xf32>
    %40 = arith.maximumf %38, %39 : vector<16x32xf32>
    %c5 = arith.constant 5 : index
    %c0_31 = arith.constant 0 : index
    %c0_32 = arith.constant 0 : index
    %41 = vector.load %arg1[%c5, %c0_31, %c0_32] : memref<8x32x32xf32, #tpu.memory_space<vmem>>, vector<1x32x32xf32>
    %42 = vector.shape_cast %41 : vector<1x32x32xf32> to vector<32x32xf32>
    %cst_33 = arith.constant dense<0.000000e+00> : vector<16x32xf32>
    %43 = tpu.matmul %40, %42, %cst_33 {dimension_numbers = #tpu.dot_dimension_numbers<[1], [0], [0], [1], [0, 0, 1, 1], [], []>} : vector<16x32xf32>, vector<32x32xf32>, vector<16x32xf32> -> vector<16x32xf32>
    %c5_34 = arith.constant 5 : index
    %c0_35 = arith.constant 0 : index
    %44 = vector.load %arg2[%c5_34, %c0_35] : memref<8x32xf32, #tpu.memory_space<vmem>>, vector<1x32xf32>
    %45 = vector.broadcast %44 : vector<1x32xf32> to vector<16x32xf32>
    %46 = arith.addf %43, %45 : vector<16x32xf32>
    %c6 = arith.constant 6 : index
    %c0_36 = arith.constant 0 : index
    %c0_37 = arith.constant 0 : index
    %47 = vector.load %arg1[%c6, %c0_36, %c0_37] : memref<8x32x32xf32, #tpu.memory_space<vmem>>, vector<1x32x32xf32>
    %48 = vector.shape_cast %47 : vector<1x32x32xf32> to vector<32x32xf32>
    %c6_38 = arith.constant 6 : index
    %c0_39 = arith.constant 0 : index
    %49 = vector.load %arg2[%c6_38, %c0_39] : memref<8x32xf32, #tpu.memory_space<vmem>>, vector<1x32xf32>
    %50 = vector.shape_cast %49 : vector<1x32xf32> to vector<1x32xf32>
    %51 = vector.broadcast %50 : vector<1x32xf32> to vector<16x32xf32>
    %cst_40 = arith.constant dense<0.000000e+00> : vector<16x32xf32>
    %52 = tpu.matmul %46, %48, %cst_40 {dimension_numbers = #tpu.dot_dimension_numbers<[1], [0], [0], [1], [0, 0, 1, 1], [], []>} : vector<16x32xf32>, vector<32x32xf32>, vector<16x32xf32> -> vector<16x32xf32>
    %53 = arith.addf %52, %51 : vector<16x32xf32>
    %cst_41 = arith.constant 0.000000e+00 : f32
    %54 = vector.broadcast %cst_41 : f32 to vector<16x32xf32>
    %55 = arith.maximumf %53, %54 : vector<16x32xf32>
    %56 = arith.addf %55, %46 : vector<16x32xf32>
    %cst_42 = arith.constant dense<0.000000e+00> : vector<16x32xf32>
    %57 = tpu.matmul %56, %48, %cst_42 {dimension_numbers = #tpu.dot_dimension_numbers<[1], [0], [0], [1], [0, 0, 1, 1], [], []>} : vector<16x32xf32>, vector<32x32xf32>, vector<16x32xf32> -> vector<16x32xf32>
    %58 = arith.addf %57, %51 : vector<16x32xf32>
    %cst_43 = arith.constant 0.000000e+00 : f32
    %59 = vector.broadcast %cst_43 : f32 to vector<16x32xf32>
    %60 = arith.maximumf %58, %59 : vector<16x32xf32>
    %61 = arith.addf %60, %56 : vector<16x32xf32>
    %cst_44 = arith.constant dense<0.000000e+00> : vector<16x32xf32>
    %62 = tpu.matmul %61, %48, %cst_44 {dimension_numbers = #tpu.dot_dimension_numbers<[1], [0], [0], [1], [0, 0, 1, 1], [], []>} : vector<16x32xf32>, vector<32x32xf32>, vector<16x32xf32> -> vector<16x32xf32>
    %63 = arith.addf %62, %51 : vector<16x32xf32>
    %cst_45 = arith.constant 0.000000e+00 : f32
    %64 = vector.broadcast %cst_45 : f32 to vector<16x32xf32>
    %65 = arith.maximumf %63, %64 : vector<16x32xf32>
    %66 = arith.addf %65, %61 : vector<16x32xf32>
    %c7 = arith.constant 7 : index
    %c0_46 = arith.constant 0 : index
    %c0_47 = arith.constant 0 : index
    %67 = vector.load %arg1[%c7, %c0_46, %c0_47] : memref<8x32x32xf32, #tpu.memory_space<vmem>>, vector<1x32x32xf32>
    %68 = vector.shape_cast %67 : vector<1x32x32xf32> to vector<32x32xf32>
    %cst_48 = arith.constant dense<0.000000e+00> : vector<16x32xf32>
    %69 = tpu.matmul %66, %68, %cst_48 {dimension_numbers = #tpu.dot_dimension_numbers<[1], [0], [0], [1], [0, 0, 1, 1], [], []>} : vector<16x32xf32>, vector<32x32xf32>, vector<16x32xf32> -> vector<16x32xf32>
    %c7_49 = arith.constant 7 : index
    %c0_50 = arith.constant 0 : index
    %70 = vector.load %arg2[%c7_49, %c0_50] : memref<8x32xf32, #tpu.memory_space<vmem>>, vector<1x32xf32>
    %71 = vector.broadcast %70 : vector<1x32xf32> to vector<16x32xf32>
    %72 = arith.addf %69, %71 : vector<16x32xf32>
    %73 = vector.extract_strided_slice %72 {offsets = [0, 0], sizes = [16, 1], strides = [1, 1]} : vector<16x32xf32> to vector<16x1xf32>
    %c0_51 = arith.constant 0 : index
    %c0_52 = arith.constant 0 : index
    %74 = vector.load %arg3[%c0_51, %c0_52] : memref<16x1xf32, #tpu.memory_space<vmem>>, vector<16x1xf32>
    tpu.vector_store %arg3[%c0_51, %c0_52], %73 {strides = array<i32>} : memref<16x1xf32, #tpu.memory_space<vmem>>, vector<16x1xf32>,
    return
  }
}

</mosaic_0001>

<bundles_post_ra>
// kernel: tpp_mlp_forward.1
= control target key start
LH: loop header
LB: loop body
LE: loop exit
PB: predicated region body
PF: predicated region fallthrough
CT: control target
= control target key end

     0   :  { %8 = vsyncpa [#allocation3], 0  ;;  %s1380_s0 = inlined_call_operand.hbm [shape: f32[16,16], index: 0, kind: input, shape index: {}]   ;;  %s1381_s1 = inlined_call_operand.hbm [shape: f32[8,32,32], index: 1, kind: input, shape index: {}]   ;;  %s1382_s2 = inlined_call_operand.vmem [shape: f32[8,32], index: 2, kind: input, shape index: {}]   ;;  %s1383_s3 = inlined_call_operand.vmem [shape: f32[16,1], index: 3, kind: output, shape index: {}]  }
   0x1   :  { %9 = vsyncpa [#allocation5], 0  ;;  %s1284_s12 = smov [#allocation2]   ;;  %s1236_s16 = scalar_lea.hbm %s1380_s0, 256 }
   0x2   :  { %s15_s13 = sshll.u32 %s1284_s12, 4  ;;  %p1237_p0 = scmp.ne.s32.totalorder %s1380_s0, %s1236_s16  ;;  %s16_s13 = int_to_ptr.vmem [resolvable:$true] %s15_s13 }
   0x3   :  { %p1240_p1 = scmp.lt.u32.totalorder %s1236_s16, %s1380_s0 }
   0x5   :  { %p1242_p2 = pnand %p1240_p1, %p1237_p0 }
   0x7   :  { %1245 = shalt.err (!%p1242_p2)
}
   0x8   :  { %s1246_s21 = scalar_lea.vmem %s16_s13, 256  ;;  %p1251_p4 = scmp.lt.s32.totalorder %s16_s13, %s16_s13 }
   0x9   :  { %p1247_p3 = scmp.ne.s32.totalorder %s16_s13, %s1246_s21  ;;  %p1252_p5 = scmp.lt.s32.totalorder %s1246_s21, %s1246_s21 }
   0xb   :  { %p1253_p6 = por %p1252_p5, %p1251_p4 }
   0xd   :  { %p1254_p7 = pnand %p1253_p6, %p1247_p3 }
   0xf   :  { %1257 = shalt.err (!%p1254_p7)
}
  0x10   :  { %s1285_s22 = smov 128   ;;  %s1286_s23 = smov 8  }
  0x11   :  { %21 = dma.hbm_to_vmem [thread:$0]  %s1380_s0, 256, %s16_s13, [#allocation3], %s1285_s22, %s1285_s22, %s1286_s23  }
  0x12   :  { %s1287_s26 = smov [#allocation4]   ;;  %s1258_s30 = scalar_lea.hbm %s1381_s1, 4096 }
  0x13   :  { %s27_s27 = sshll.u32 %s1287_s26, 4  ;;  %p1259_p8 = scmp.ne.s32.totalorder %s1381_s1, %s1258_s30  ;;  %s28_s27 = int_to_ptr.vmem [resolvable:$true] %s27_s27 }
  0x14   :  { %p1262_p9 = scmp.lt.u32.totalorder %s1258_s30, %s1381_s1 }
  0x16   :  { %p1264_p10 = pnand %p1262_p9, %p1259_p8 }
  0x18   :  { %1267 = shalt.err (!%p1264_p10)
}
  0x19   :  { %s1268_s8 = scalar_lea.vmem %s28_s27, 4096  ;;  %p1273_p12 = scmp.lt.s32.totalorder %s28_s27, %s28_s27 }
  0x1a   :  { %p1269_p11 = scmp.ne.s32.totalorder %s28_s27, %s1268_s8  ;;  %p1274_p13 = scmp.lt.s32.totalorder %s1268_s8, %s1268_s8 }
  0x1c   :  { %p1275_p0 = por %p1274_p13, %p1273_p12 }
  0x1e   :  { %p1276_p1 = pnand %p1275_p0, %p1269_p11 }
  0x20   :  { %1279 = shalt.err (!%p1276_p1)
}
  0x21   :  { %33 = dma.hbm_to_vmem [thread:$0]  %s1381_s1, 4096, %s28_s27, [#allocation5], %s1285_s22, %s1285_s22, %s1286_s23  }
  0x22   :  { %1280 = dma.done.wait [#allocation3], 256  }
  0x23   :  { %1281 = vsyncadd [#allocation3], 4294967040 }
  0x24   :  { %1282 = dma.done.wait [#allocation5], 4096  }
  0x25   :  { %1283 = vsyncadd [#allocation5], 4294963200  ;;  %vm51_vm0 = vcmask 130048   ;;  %v44_v0 = vld [vmem:[#allocation4] sm:$0xff]  ;;  %v45_v1 = vld [vmem:[#allocation4 + $0x8] sm:$0xff]  ;;  %vm145_vm1 = vcmask 261120  }
  0x26   :  { %v42_v2 = vld [vmem:[#allocation2] sm:$0xff]  ;;  %v1156_v3 = vpack.c.bf16 %v45_v1, %v44_v0  ;;  %v136_v4 = vld [vmem:[#allocation4 + $0x20] sm:$0xff]  ;;  %v137_v5 = vld [vmem:[#allocation4 + $0x28] sm:$0xff]  ;;  %vm955_vm2 = vcmask 7168  }
  0x27   :  { %1054 = vmatprep.mubr.msk.f32.mxu0 %vm51_vm0, %v42_v2  ;;  %v1160_v6 = vpack.c.bf16 %v137_v5, %v136_v4  ;;  %v43_v7 = vld [vmem:[#allocation2 + $0x8] sm:$0xff]  ;;  %v138_v8 = vld [vmem:[#allocation4 + $0x30] sm:$0xff]  ;;  %v230_v11 = vld [vmem:[#allocation4 + $0x40] sm:$0xff] }
  0x28   :  { %1157 = vmatprep.subr.bf16.mxu0 %v1156_v3  ;;  %v139_v9 = vld [vmem:[#allocation4 + $0x38] sm:$0xff]  ;;  %v231_v12 = vld [vmem:[#allocation4 + $0x48] sm:$0xff]  ;;  %v964_v14 = vld [vmem:[%s1382_s2] ss:$0 sm:$0xff] }
  0x29   :  { %1159 = vmatpush3.bf16.msra.mxu0 %v1156_v3  ;;  %1161 = vmatprep.subr.bf16.mxu1 %v1160_v6  ;;  %v1164_v10 = vpack.c.bf16 %v139_v9, %v138_v8  ;;  %v1168_v13 = vpack.c.bf16 %v231_v12, %v230_v11  ;;  %v232_v21 = vld [vmem:[#allocation4 + $0x50] sm:$0xff]  ;;  %v233_v22 = vld [vmem:[#allocation4 + $0x58] sm:$0xff]  ;;  %v323_v24 = vld [vmem:[#allocation4 + $0x60] sm:$0xff] }
  0x2a   :  { %1163 = vmatpush3.bf16.msra.mxu1 %v1160_v6  ;;  %v1172_v23 = vpack.c.bf16 %v233_v22, %v232_v21  ;;  %v324_v25 = vld [vmem:[#allocation4 + $0x68] sm:$0xff]  ;;  %v967_v27 = vld [vmem:[%s1382_s2 + $0x1] ss:$0 sm:$0xff]  ;;  %v326_v35 = vld [vmem:[#allocation4 + $0x78] sm:$0xff] }
  0x2b   :  { %1165 = vmatprep.subr.bf16.mxu1 %v1164_v10  ;;  %1169 = vmatprep.subr.bf16.mxu0 %v1168_v13  ;;  %v1176_v26 = vpack.c.bf16 %v324_v25, %v323_v24  ;;  %v325_v34 = vld [vmem:[#allocation4 + $0x70] sm:$0xff]  ;;  %v416_v37 = vld [vmem:[#allocation4 + $0x80] sm:$0xff]  ;;  %v417_v38 = vld [vmem:[#allocation4 + $0x88] sm:$0xff] }
  0x2c   :  { %1055 = vmatmul.mubr.msk.f32.vlgmr.msra.gmra.mrb[0].mxu0 %vm51_vm0, %v43_v7  ;;  %v1180_v36 = vpack.c.bf16 %v326_v35, %v325_v34  ;;  %v1184_v39 = vpack.c.bf16 %v417_v38, %v416_v37  ;;  %v970_v40 = vld [vmem:[%s1382_s2 + $0x2] ss:$0 sm:$0xff]  ;;  %v419_v48 = vld [vmem:[#allocation4 + $0x98] sm:$0xff]  ;;  %v509_v50 = vld [vmem:[#allocation4 + $0xa0] sm:$0xff] }
  0x2d   :  { %1171 = vmatpush3.bf16.msra.mxu0 %v1168_v13  ;;  %v418_v47 = vld [vmem:[#allocation4 + $0x90] sm:$0xff]  ;;  %v510_v51 = vld [vmem:[#allocation4 + $0xa8] sm:$0xff]  ;;  %v512_v61 = vld [vmem:[#allocation4 + $0xb8] sm:$0xff] }
  0x2e   :  { %1167 = vmatpush3.bf16.msra.mxu1 %v1164_v10  ;;  %1173 = vmatprep.subr.bf16.mxu0 %v1172_v23  ;;  %v1188_v49 = vpack.c.bf16 %v419_v48, %v418_v47  ;;  %v1192_v52 = vpack.c.bf16 %v510_v51, %v509_v50  ;;  %v973_v53 = vld [vmem:[%s1382_s2 + $0x3] ss:$0 sm:$0xff]  ;;  %v600_v63 = vld [vmem:[#allocation4 + $0xc0] sm:$0xff]  ;;  %v601_v0 = vld [vmem:[#allocation4 + $0xc8] sm:$0xff] }
  0x2f   :  { %1177 = vmatprep.subr.bf16.mxu1 %v1176_v26  ;;  %v511_v60 = vld [vmem:[#allocation4 + $0xb0] sm:$0xff]  ;;  %v1200_v1 = vpack.c.bf16 %v601_v0, %v600_v63  ;;  %v603_v10 = vld [vmem:[#allocation4 + $0xd8] sm:$0xff]  ;;  %v865_v34 = vld [vmem:[#allocation4 + $0xe0] sm:$0xff] }
  0x30   :  { %v1196_v62 = vpack.c.bf16 %v512_v61, %v511_v60  ;;  %v976_v2 = vld [vmem:[%s1382_s2 + $0x4] ss:$0 sm:$0xff]  ;;  %v979_v12 = vld [vmem:[%s1382_s2 + $0x5] ss:$0 sm:$0xff]  ;;  %v866_v35 = vld [vmem:[#allocation4 + $0xe8] sm:$0xff] }
  0x31   :  { %1175 = vmatpush3.bf16.msra.mxu0 %v1172_v23  ;;  %v602_v9 = vld [vmem:[#allocation4 + $0xd0] sm:$0xff]  ;;  %v868_v38 = vld [vmem:[#allocation4 + $0xf8] sm:$0xff] }
  0x32   :  { %1185 = vmatprep.subr.bf16.mxu0 %v1184_v39  ;;  %v1204_v11 = vpack.c.bf16 %v603_v10, %v602_v9  ;;  %v867_v37 = vld [vmem:[#allocation4 + $0xf0] sm:$0xff] }
  0x33   :  { %v989_v48 = vld [vmem:[%s1382_s2 + $0x7] ss:$0 sm:$0xff] }
  0xff   :  { %v1056_v15 = vpop.f32.mrb[0].mxu0 }
 0x100   :  { %v130_v16 = vadd.f32 %v1056_v15, %v964_v14  ;;  %v124_v17 = vpop.f32.mrb[1].mxu0 }
 0x101   :  { %v125_v18 = vadd.f32 %v964_v14, %v124_v17  ;;  %v982_v17 = vld [vmem:[%s1382_s2 + $0x6] ss:$0 sm:$0xff] }
 0x102   :  { %v134_v20 = vmax.f32 %v130_v16, 0.0 }
 0x103   :  { %v133_v19 = vmax.f32 %v125_v18, 0.0 }
 0x105   :  { %1065 = vmatprep.mubr.msk.f32.mxu1 %vm145_vm1, %v133_v19 }
 0x106   :  { %1066 = vmatmul.mubr.msk.f32.vlgmr.msra.gmra.mrb[0].mxu1 %vm145_vm1, %v134_v20 }
 0x107   :  { %1179 = vmatpush3.bf16.msra.mxu1 %v1176_v26 }
 0x108   :  { %1181 = vmatprep.subr.bf16.mxu1 %v1180_v36 }
 0x10b   :  { %1183 = vmatpush3.bf16.msra.mxu1 %v1180_v36  ;;  %v1224_v36 = vpack.c.bf16 %v866_v35, %v865_v34 }
 0x10c   :  { %1193 = vmatprep.subr.bf16.mxu1 %v1192_v52 }
 0x1d9   :  { %v1067_v28 = vpop.f32.mrb[0].mxu1 }
 0x1da   :  { %v224_v29 = vadd.f32 %v1067_v28, %v967_v27  ;;  %v218_v30 = vpop.f32.mrb[1].mxu1 }
 0x1db   :  { %v219_v31 = vadd.f32 %v967_v27, %v218_v30 }
 0x1dc   :  { %v228_v33 = vmax.f32 %v224_v29, 0.0 }
 0x1dd   :  { %v227_v32 = vmax.f32 %v219_v31, 0.0 }
 0x1df   :  { %1076 = vmatprep.mubr.msk.f32.mxu0 %vm145_vm1, %v227_v32 }
 0x1e0   :  { %1077 = vmatmul.mubr.msk.f32.vlgmr.msra.gmra.mrb[2].mxu0 %vm145_vm1, %v228_v33 }
 0x1e1   :  { %1187 = vmatpush3.bf16.msra.mxu0 %v1184_v39  ;;  %v1228_v39 = vpack.c.bf16 %v868_v38, %v867_v37 }
 0x1e2   :  { %1189 = vmatprep.subr.bf16.mxu0 %v1188_v49 }
 0x1e5   :  { %1191 = vmatpush3.bf16.msra.mxu0 %v1188_v49 }
 0x1e6   :  { %1201 = vmatprep.subr.bf16.mxu0 %v1200_v1 }
 0x2b3   :  { %v1078_v41 = vpop.f32.mrb[2].mxu0 }
 0x2b4   :  { %v317_v42 = vadd.f32 %v1078_v41, %v970_v40  ;;  %v311_v43 = vpop.f32.mrb[3].mxu0 }
 0x2b5   :  { %v312_v44 = vadd.f32 %v970_v40, %v311_v43 }
 0x2b6   :  { %v321_v46 = vmax.f32 %v317_v42, 0.0 }
 0x2b7   :  { %v320_v45 = vmax.f32 %v312_v44, 0.0 }
 0x2b9   :  { %1087 = vmatprep.mubr.msk.f32.mxu1 %vm145_vm1, %v320_v45 }
 0x2ba   :  { %1088 = vmatmul.mubr.msk.f32.vlgmr.msra.gmra.mrb[2].mxu1 %vm145_vm1, %v321_v46 }
 0x2bb   :  { %1195 = vmatpush3.bf16.msra.mxu1 %v1192_v52 }
 0x2bc   :  { %1197 = vmatprep.subr.bf16.mxu1 %v1196_v62 }
 0x2bf   :  { %1199 = vmatpush3.bf16.msra.mxu1 %v1196_v62 }
 0x2c0   :  { %1209 = vmatprep.subr.bf16.mxu1 %v1200_v1 }
 0x38d   :  { %v1089_v54 = vpop.f32.mrb[2].mxu1 }
 0x38e   :  { %v410_v55 = vadd.f32 %v1089_v54, %v973_v53  ;;  %v404_v56 = vpop.f32.mrb[3].mxu1 }
 0x38f   :  { %v405_v57 = vadd.f32 %v973_v53, %v404_v56 }
 0x390   :  { %v414_v59 = vmax.f32 %v410_v55, 0.0 }
 0x391   :  { %v413_v58 = vmax.f32 %v405_v57, 0.0 }
 0x393   :  { %1098 = vmatprep.mubr.msk.f32.mxu0 %vm145_vm1, %v413_v58 }
 0x394   :  { %1099 = vmatmul.mubr.msk.f32.vlgmr.msra.gmra.mrb[4].mxu0 %vm145_vm1, %v414_v59 }
 0x395   :  { %1203 = vmatpush3.bf16.msra.mxu0 %v1200_v1 }
 0x396   :  { %1205 = vmatprep.subr.bf16.mxu0 %v1204_v11 }
 0x399   :  { %1207 = vmatpush3.bf16.msra.mxu0 %v1204_v11 }
 0x39a   :  { %1217 = vmatprep.subr.bf16.mxu0 %v1200_v1 }
 0x467   :  { %v1100_v3 = vpop.f32.mrb[4].mxu0 }
 0x468   :  { %v503_v4 = vadd.f32 %v1100_v3, %v976_v2  ;;  %v497_v5 = vpop.f32.mrb[5].mxu0 }
 0x469   :  { %v498_v6 = vadd.f32 %v976_v2, %v497_v5 }
 0x46a   :  { %v507_v8 = vmax.f32 %v503_v4, 0.0 }
 0x46b   :  { %v506_v7 = vmax.f32 %v498_v6, 0.0 }
 0x46d   :  { %1109 = vmatprep.mubr.msk.f32.mxu1 %vm145_vm1, %v506_v7 }
 0x46e   :  { %1110 = vmatmul.mubr.msk.f32.vlgmr.msra.gmra.mrb[4].mxu1 %vm145_vm1, %v507_v8 }
 0x46f   :  { %1211 = vmatpush3.bf16.msra.mxu1 %v1200_v1 }
 0x470   :  { %1213 = vmatprep.subr.bf16.mxu1 %v1204_v11 }
 0x473   :  { %1215 = vmatpush3.bf16.msra.mxu1 %v1204_v11 }
 0x474   :  { %1225 = vmatprep.subr.bf16.mxu1 %v1224_v36 }
 0x541   :  { %v1111_v13 = vpop.f32.mrb[4].mxu1 }
 0x542   :  { %v590_v14 = vpop.f32.mrb[5].mxu1  ;;  %v596_v16 = vadd.f32 %v1111_v13, %v979_v12 }
 0x543   :  { %v591_v15 = vadd.f32 %v979_v12, %v590_v14 }
 0x545   :  { %1120 = vmatprep.mubr.msk.f32.mxu0 %vm145_vm1, %v591_v15 }
 0x546   :  { %1121 = vmatmul.mubr.msk.f32.vlgmr.msra.gmra.mrb[6].mxu0 %vm145_vm1, %v596_v16 }
 0x547   :  { %1219 = vmatpush3.bf16.msra.mxu0 %v1200_v1 }
 0x548   :  { %1221 = vmatprep.subr.bf16.mxu0 %v1204_v11 }
 0x54b   :  { %1223 = vmatpush3.bf16.msra.mxu0 %v1204_v11 }
 0x619   :  { %v1122_v18 = vpop.f32.mrb[6].mxu0 }
 0x61a   :  { %v687_v19 = vadd.f32 %v1122_v18, %v982_v17  ;;  %v681_v20 = vpop.f32.mrb[7].mxu0 }
 0x61b   :  { %v682_v21 = vadd.f32 %v982_v17, %v681_v20 }
 0x61c   :  { %v691_v22 = vmax.f32 %v687_v19, 0.0 }
 0x61d   :  { %v690_v23 = vmax.f32 %v682_v21, 0.0 }
 0x61e   :  { %v693_v25 = vadd.f32 %v691_v22, %v596_v16 }
 0x61f   :  { %v692_v24 = vadd.f32 %v690_v23, %v591_v15 }
 0x621   :  { %1131 = vmatprep.mubr.msk.f32.mxu1 %vm145_vm1, %v692_v24 }
 0x622   :  { %1132 = vmatmul.mubr.msk.f32.vlgmr.msra.gmra.mrb[6].mxu1 %vm145_vm1, %v693_v25 }
 0x623   :  { %1227 = vmatpush3.bf16.msra.mxu1 %v1224_v36 }
 0x624   :  { %1229 = vmatprep.subr.bf16.mxu1 %v1228_v39 }
 0x627   :  { %1231 = vmatpush3.bf16.msra.mxu1 %v1228_v39 }
 0x6f5   :  { %v1133_v26 = vpop.f32.mrb[6].mxu1 }
 0x6f6   :  { %v772_v27 = vadd.f32 %v1133_v26, %v982_v17  ;;  %v766_v28 = vpop.f32.mrb[7].mxu1 }
 0x6f7   :  { %v767_v29 = vadd.f32 %v982_v17, %v766_v28 }
 0x6f8   :  { %v776_v30 = vmax.f32 %v772_v27, 0.0 }
 0x6f9   :  { %v775_v31 = vmax.f32 %v767_v29, 0.0 }
 0x6fa   :  { %v778_v33 = vadd.f32 %v776_v30, %v693_v25 }
 0x6fb   :  { %v777_v32 = vadd.f32 %v775_v31, %v692_v24 }
 0x6fd   :  { %1142 = vmatprep.mubr.msk.f32.mxu0 %vm145_vm1, %v777_v32 }
 0x6fe   :  { %1143 = vmatmul.mubr.msk.f32.vlgmr.msra.gmra.mrb[8].mxu0 %vm145_vm1, %v778_v33 }
 0x7d1   :  { %v1144_v40 = vpop.f32.mrb[8].mxu0 }
 0x7d2   :  { %v857_v41 = vadd.f32 %v1144_v40, %v982_v17  ;;  %v851_v42 = vpop.f32.mrb[9].mxu0 }
 0x7d3   :  { %v852_v43 = vadd.f32 %v982_v17, %v851_v42 }
 0x7d4   :  { %v861_v44 = vmax.f32 %v857_v41, 0.0 }
 0x7d5   :  { %v860_v45 = vmax.f32 %v852_v43, 0.0 }
 0x7d6   :  { %v863_v47 = vadd.f32 %v861_v44, %v778_v33 }
 0x7d7   :  { %v862_v46 = vadd.f32 %v860_v45, %v777_v32 }
 0x7d9   :  { %1153 = vmatprep.mubr.msk.f32.mxu1 %vm145_vm1, %v862_v46 }
 0x7da   :  { %1154 = vmatmul.mubr.msk.f32.vlgmr.msra.gmra.mrb[8].mxu1 %vm145_vm1, %v863_v47 }
 0x8ad   :  { %v1155_v49 = vpop.f32.mrb[8].mxu1 }
 0x8ae   :  { %v952_v50 = vadd.f32 %v1155_v49, %v989_v48  ;;  %v946_v51 = vpop.f32.mrb[9].mxu1 }
 0x8af   :  { %v947_v52 = vadd.f32 %v989_v48, %v946_v51 }
 0x8b0   :  { %957 = vst.msk [vmem:[%s1383_s3 + $0x8] sm:$0xff] %vm955_vm2, %v952_v50 }
 0x8b1   :  { %956 = vst.msk [vmem:[%s1383_s3] sm:$0xff] %vm955_vm2, %v947_v52 }
 0x8b2   :  { %962 = vsyncpa [#allocation3], 1 }
 0x8b3   :  { %963 = vsyncpa [#allocation5], 1 }

</bundles_post_ra>
